<compile_context>
chip_gen: v7x
topology: tpu7x:2x2x1
jax: 0.10.0
libtpu: 0.0.40
codegen_flags: <defaults>
</compile_context>

<pallas_src>
import math

import jax
import jax.numpy as jnp
from jax.experimental import pallas as pl
from jax.experimental.pallas import tpu as pltpu


# ------------------------------------------------------------------ small helpers

def _round_up(a, b):
    return (a + b - 1) // b * b


def _cdiv(a, b):
    return (a + b - 1) // b


# ------------------------------------------------------------------ in-kernel math

def _erf(z):
    """erf via Abramowitz & Stegun 7.1.26 (|err| <= 1.5e-7).  Uses only mul/add/where plus
    exp and an EUP reciprocal, all of which lower cleanly in Mosaic."""
    a1, a2, a3, a4, a5 = 0.254829592, -0.284496736, 1.421413741, -1.453152027, 1.061405429
    p = 0.3275911
    az = jnp.abs(z)
    # EUP reciprocal instead of a VALU divide: the EUP slot is otherwise idle here.
    t = pl.reciprocal(1.0 + p * az, approx=True)
    poly = t * (a1 + t * (a2 + t * (a3 + t * (a4 + t * a5))))
    e = 1.0 - poly * jnp.exp(-az * az)
    return jnp.where(z >= 0, e, -e)


def _gelu_exact(x):
    # Matches nn.GELU() (erf form), up to the ~1.5e-7 erf approximation error.
    return 0.5 * x * (1.0 + _erf(x * 0.7071067811865476))


# ------------------------------------------------------------------ fused MLP kernel

def _mlp_kernel(x_ref, w1_ref, b1_ref, w2_ref, b2_ref, o_ref):
    """x_ref: (TM, Din); w1: (Din, Dh_pad) bf16; b1: (1, Dh_pad) f32;
    w2: (Dh_pad, Dout_pad) bf16; b2: (1, Dout_pad) f32; o_ref: (TM, Dout_pad) f32.
    fc1 -> GELU -> fc2 fused; the hidden activation stays in vregs/VMEM."""
    x = x_ref[...].astype(w1_ref.dtype)                       # bf16 operands for the MXU
    h = jnp.dot(x, w1_ref[...], preferred_element_type=jnp.float32) + b1_ref[...]
    h = _gelu_exact(h)                                        # elementwise kept in f32 (v5e-safe)
    # nn.Dropout(p=0.0) is the identity in both train and eval.
    o_ref[...] = (jnp.dot(h.astype(w2_ref.dtype), w2_ref[...],
                          preferred_element_type=jnp.float32)
                  + b2_ref[...]).astype(o_ref.dtype)


# ------------------------------------------------------------------ wrapper

def _vmem_budget_bytes(tm, d_in, d_h_pad, d_out_pad, x_itemsize, w_itemsize):
    dbl = 2  # Pallas double-buffers every pipelined block (incl. the grid-invariant ones)
    est = (dbl * tm * d_in * x_itemsize                       # input row tiles
           + dbl * tm * d_out_pad * 4                         # f32 output row tiles
           + dbl * (d_in * d_h_pad + d_h_pad * d_out_pad) * w_itemsize   # weights
           + dbl * 2 * d_h_pad * 4                            # biases
           + 4 * tm * d_h_pad * 4)                            # fc1/GELU f32 temporaries headroom
    # Upper bound only (not a reservation); cap at 64 MiB so it is always legal on v7x.
    return int(min(64 * 1024 * 1024, max(32 * 1024 * 1024, 2 * est)))


def mlp_forward(packed, x, *, out_features, row_tile=256):
    """packed: output of pack_mlp_params.  x: (..., in_features).  Returns (..., out_features)."""
    w1, b1, w2, b2 = packed["w1"], packed["b1"], packed["w2"], packed["b2"]
    d_in, d_h_pad = w1.shape
    d_out_pad = w2.shape[1]

    lead = x.shape[:-1]
    m = int(math.prod(lead)) if lead else 1
    x2 = x.reshape(m, d_in)

    # Row tiling: multiples of 8 sublanes; no padded copy of x (cdiv grid, ragged last tile).
    m_aligned = _round_up(max(m, 1), 8)
    tm = min(row_tile, m_aligned)
    # v7x megacore: prefer >= 2 "parallel" row tiles so both TensorCores get work.
    if _cdiv(m_aligned, tm) < 2 and m_aligned >= 16:
        tm = _round_up(_cdiv(m_aligned, 2), 8)
    grid = (_cdiv(m, tm),)

    vmem_limit = _vmem_budget_bytes(tm, d_in, d_h_pad, d_out_pad,
                                    x2.dtype.itemsize, w1.dtype.itemsize)

    out = pl.pallas_call(
        _mlp_kernel,
        out_shape=jax.ShapeDtypeStruct((m, d_out_pad), jnp.float32),
        grid=grid,
        in_specs=[
            pl.BlockSpec((tm, d_in), lambda i: (i, 0)),
            # Grid-invariant blocks (constant index_map): DMA'd once, reused every step.
            pl.BlockSpec((d_in, d_h_pad), lambda i: (0, 0)),
            pl.BlockSpec((1, d_h_pad), lambda i: (0, 0)),
            pl.BlockSpec((d_h_pad, d_out_pad), lambda i: (0, 0)),
            pl.BlockSpec((1, d_out_pad), lambda i: (0, 0)),
        ],
        out_specs=pl.BlockSpec((tm, d_out_pad), lambda i: (i, 0)),
        compiler_params=pltpu.CompilerParams(
            dimension_semantics=("parallel",),
            vmem_limit_bytes=vmem_limit,
        ),
    )(x2, w1, b1, w2, b2)

    return out[:, :out_features].reshape(*lead, out_features)


# ------------------------------------------------------------------ init + packing + reference

def init_mlp_params(key, in_features, hidden_features, out_features):
    """Matches PyTorch nn.Linear default init (U(-1/sqrt(fan_in), 1/sqrt(fan_in))).
    Weights stored pre-transposed as (in, out) so the kernel computes x @ W + b."""
    k1, k2, k3, k4 = jax.random.split(key, 4)
    lim1 = 1.0 / math.sqrt(in_features)
    lim2 = 1.0 / math.sqrt(hidden_features)
    return {
        "w1": jax.random.uniform(k1, (in_features, hidden_features), jnp.float32, -lim1, lim1),
        "b1": jax.random.uniform(k2, (hidden_features,), jnp.float32, -lim1, lim1),
        "w2": jax.random.uniform(k3, (hidden_features, out_features), jnp.float32, -lim2, lim2),
        "b2": jax.random.uniform(k4, (out_features,), jnp.float32, -lim2, lim2),
    }


def pack_mlp_params(params, mxu_dtype=jnp.bfloat16):
    """One-time (per model) packing: pad hidden/out feature dims up to multiples of 128 so
    the kernel's lane axis is dense, and cast the matmul operands to bf16 for the MXU.
    Zero padding is exact: padded hidden cols get b1=0 -> GELU(0)=0, and the padded w2
    rows/cols are zero, so padded outputs are exactly 0 and are sliced off."""
    w1, b1, w2, b2 = params["w1"], params["b1"], params["w2"], params["b2"]
    d_in, d_h = w1.shape
    d_out = w2.shape[1]
    d_h_pad = _round_up(d_h, 128)
    d_out_pad = _round_up(d_out, 128)
    return {
        "w1": jnp.zeros((d_in, d_h_pad), mxu_dtype).at[:, :d_h].set(w1.astype(mxu_dtype)),
        "b1": jnp.zeros((1, d_h_pad), jnp.float32).at[:, :d_h].set(b1[None, :]),
        "w2": jnp.zeros((d_h_pad, d_out_pad), mxu_dtype).at[:d_h, :d_out].set(w2.astype(mxu_dtype)),
        "b2": jnp.zeros((1, d_out_pad), jnp.float32).at[:, :d_out].set(b2[None, :]),
    }


def mlp_reference(params, x):
    """Pure-JAX exact-f32 reference (erf GELU, like nn.GELU())."""
    h = x @ params["w1"] + params["b1"]
    h = jax.nn.gelu(h, approximate=False)
    return h @ params["w2"] + params["b2"]


# ------------------------------------------------------------------ main

if __name__ == "__main__":
    IN_FEATURES, HIDDEN_FEATURES, OUT_FEATURES = 32, 64, 32
    B, N = 2, 8   # m = 16 rows -> two row tiles of 8 (exercises the "parallel" grid)

    key = jax.random.PRNGKey(0)
    kp, kx = jax.random.split(key)
    params = init_mlp_params(kp, IN_FEATURES, HIDDEN_FEATURES, OUT_FEATURES)
    packed = pack_mlp_params(params)                       # pad + bf16-cast ONCE
    x = jax.random.normal(kx, (B, N, IN_FEATURES), jnp.float32)

    fwd = jax.jit(lambda p, xx: mlp_forward(p, xx, out_features=OUT_FEATURES))
    out = jax.block_until_ready(fwd(packed, x))

    assert out.shape == (B, N, OUT_FEATURES), out.shape
    assert bool(jnp.all(jnp.isfinite(out)))

    # bf16 MXU operands -> compare against the exact-f32 reference with a bf16-level tolerance.
    ref = mlp_reference(params, x)
    max_err = float(jnp.max(jnp.abs(out - ref)))
    assert bool(jnp.allclose(out, ref, atol=3e-2, rtol=3e-2)), max_err

    print("KERNEL_OK")
</pallas_src>

<mosaic_0001>
module attributes {stable_mosaic.version = 11 : i64} {
  func.func @_mlp_kernel(%arg0: i32, %arg1: memref<8x32xf32, #tpu.memory_space<vmem>>, %arg2: memref<32x128xbf16, #tpu.memory_space<vmem>>, %arg3: memref<1x128xf32, #tpu.memory_space<vmem>>, %arg4: memref<128x128xbf16, #tpu.memory_space<vmem>>, %arg5: memref<1x128xf32, #tpu.memory_space<vmem>>, %arg6: memref<8x128xf32, #tpu.memory_space<vmem>>) attributes {dimension_semantics = [#tpu.dimension_semantics<parallel>], iteration_bounds = array<i64: 2>, scalar_prefetch = 0 : i64, scratch_operands = 0 : i64, tpu.core_type = #tpu.core_type<tc>, window_params = [{transform_indices = @transform_0, window_bounds = array<i64: 8, 32>}, {pipeline_mode = #tpu.pipeline_mode<synchronous>, transform_indices = @transform_1, window_bounds = array<i64: 32, 128>}, {pipeline_mode = #tpu.pipeline_mode<synchronous>, transform_indices = @transform_2, window_bounds = array<i64: 1, 128>}, {pipeline_mode = #tpu.pipeline_mode<synchronous>, transform_indices = @transform_3, window_bounds = array<i64: 128, 128>}, {pipeline_mode = #tpu.pipeline_mode<synchronous>, transform_indices = @transform_4, window_bounds = array<i64: 1, 128>}, {transform_indices = @transform_5, window_bounds = array<i64: 8, 128>}]} {
    %c0 = arith.constant 0 : index
    %c0_0 = arith.constant 0 : index
    %0 = vector.load %arg1[%c0, %c0_0] : memref<8x32xf32, #tpu.memory_space<vmem>>, vector<8x32xf32>
    %1 = arith.truncf %0 : vector<8x32xf32> to vector<8x32xbf16>
    %c0_1 = arith.constant 0 : index
    %c0_2 = arith.constant 0 : index
    %2 = vector.load %arg2[%c0_1, %c0_2] : memref<32x128xbf16, #tpu.memory_space<vmem>>, vector<32x128xbf16>
    %cst = arith.constant dense<0.000000e+00> : vector<8x128xf32>
    %3 = tpu.matmul %1, %2, %cst {dimension_numbers = #tpu.dot_dimension_numbers<[1], [0], [0], [1], [0, 0, 1, 1], [], []>} : vector<8x32xbf16>, vector<32x128xbf16>, vector<8x128xf32> -> vector<8x128xf32>
    %c0_3 = arith.constant 0 : index
    %c0_4 = arith.constant 0 : index
    %4 = vector.load %arg3[%c0_3, %c0_4] : memref<1x128xf32, #tpu.memory_space<vmem>>, vector<1x128xf32>
    %5 = vector.broadcast %4 : vector<1x128xf32> to vector<8x128xf32>
    %6 = arith.addf %3, %5 : vector<8x128xf32>
    %cst_5 = arith.constant 5.000000e-01 : f32
    %7 = vector.broadcast %cst_5 : f32 to vector<8x128xf32>
    %8 = arith.mulf %7, %6 : vector<8x128xf32>
    %cst_6 = arith.constant 0.707106769 : f32
    %9 = vector.broadcast %cst_6 : f32 to vector<8x128xf32>
    %10 = arith.mulf %6, %9 : vector<8x128xf32>
    %11 = math.absf %10 : vector<8x128xf32>
    %cst_7 = arith.constant 0.327591091 : f32
    %12 = vector.broadcast %cst_7 : f32 to vector<8x128xf32>
    %13 = arith.mulf %12, %11 : vector<8x128xf32>
    %cst_8 = arith.constant 1.000000e+00 : f32
    %14 = vector.broadcast %cst_8 : f32 to vector<8x128xf32>
    %15 = arith.addf %14, %13 : vector<8x128xf32>
    %16 = tpu.reciprocal %15 {approx = true} : vector<8x128xf32> -> vector<8x128xf32>
    %cst_9 = arith.constant 1.06140542 : f32
    %17 = vector.broadcast %cst_9 : f32 to vector<8x128xf32>
    %18 = arith.mulf %16, %17 : vector<8x128xf32>
    %cst_10 = arith.constant -1.45315206 : f32
    %19 = vector.broadcast %cst_10 : f32 to vector<8x128xf32>
    %20 = arith.addf %19, %18 : vector<8x128xf32>
    %21 = arith.mulf %16, %20 : vector<8x128xf32>
    %cst_11 = arith.constant 1.42141378 : f32
    %22 = vector.broadcast %cst_11 : f32 to vector<8x128xf32>
    %23 = arith.addf %22, %21 : vector<8x128xf32>
    %24 = arith.mulf %16, %23 : vector<8x128xf32>
    %cst_12 = arith.constant -0.284496725 : f32
    %25 = vector.broadcast %cst_12 : f32 to vector<8x128xf32>
    %26 = arith.addf %25, %24 : vector<8x128xf32>
    %27 = arith.mulf %16, %26 : vector<8x128xf32>
    %cst_13 = arith.constant 0.254829586 : f32
    %28 = vector.broadcast %cst_13 : f32 to vector<8x128xf32>
    %29 = arith.addf %28, %27 : vector<8x128xf32>
    %30 = arith.mulf %16, %29 : vector<8x128xf32>
    %cst_14 = arith.constant 0.000000e+00 : f32
    %31 = vector.broadcast %cst_14 : f32 to vector<8x128xf32>
    %32 = arith.subf %31, %11 : vector<8x128xf32>
    %33 = arith.mulf %32, %11 : vector<8x128xf32>
    %34 = math.exp %33 : vector<8x128xf32>
    %35 = arith.mulf %30, %34 : vector<8x128xf32>
    %cst_15 = arith.constant 1.000000e+00 : f32
    %36 = vector.broadcast %cst_15 : f32 to vector<8x128xf32>
    %37 = arith.subf %36, %35 : vector<8x128xf32>
    %cst_16 = arith.constant 0.000000e+00 : f32
    %38 = vector.broadcast %cst_16 : f32 to vector<8x128xf32>
    %39 = arith.cmpf oge, %10, %38 : vector<8x128xf32>
    %cst_17 = arith.constant 0.000000e+00 : f32
    %40 = vector.broadcast %cst_17 : f32 to vector<8x128xf32>
    %41 = arith.subf %40, %37 : vector<8x128xf32>
    %42 = arith.select %39, %37, %41 : vector<8x128xi1>, vector<8x128xf32>
    %cst_18 = arith.constant 1.000000e+00 : f32
    %43 = vector.broadcast %cst_18 : f32 to vector<8x128xf32>
    %44 = arith.addf %43, %42 : vector<8x128xf32>
    %45 = arith.mulf %8, %44 : vector<8x128xf32>
    %46 = arith.truncf %45 : vector<8x128xf32> to vector<8x128xbf16>
    %c0_19 = arith.constant 0 : index
    %c0_20 = arith.constant 0 : index
    %47 = vector.load %arg4[%c0_19, %c0_20] : memref<128x128xbf16, #tpu.memory_space<vmem>>, vector<128x128xbf16>
    %cst_21 = arith.constant dense<0.000000e+00> : vector<8x128xf32>
    %48 = tpu.matmul %46, %47, %cst_21 {dimension_numbers = #tpu.dot_dimension_numbers<[1], [0], [0], [1], [0, 0, 1, 1], [], []>} : vector<8x128xbf16>, vector<128x128xbf16>, vector<8x128xf32> -> vector<8x128xf32>
    %c0_22 = arith.constant 0 : index
    %c0_23 = arith.constant 0 : index
    %49 = vector.load %arg5[%c0_22, %c0_23] : memref<1x128xf32, #tpu.memory_space<vmem>>, vector<1x128xf32>
    %50 = vector.broadcast %49 : vector<1x128xf32> to vector<8x128xf32>
    %51 = arith.addf %48, %50 : vector<8x128xf32>
    %c0_24 = arith.constant 0 : index
    %c0_25 = arith.constant 0 : index
    %52 = vector.load %arg6[%c0_24, %c0_25] : memref<8x128xf32, #tpu.memory_space<vmem>>, vector<8x128xf32>
    tpu.vector_store %arg6[%c0_24, %c0_25], %51 {strides = array<i32>} : memref<8x128xf32, #tpu.memory_space<vmem>>, vector<8x128xf32>,
    return
  }
  func.func @transform_0(%arg0: i32) -> (i32, i32) {
    %c0_i32 = arith.constant 0 : i32
    %c0_i32_0 = arith.constant 0 : i32
    return %arg0, %c0_i32 : i32, i32
  }
  func.func @transform_1(%arg0: i32) -> (i32, i32) {
    %c0_i32 = arith.constant 0 : i32
    %c0_i32_0 = arith.constant 0 : i32
    %c0_i32_1 = arith.constant 0 : i32
    return %c0_i32, %c0_i32_0 : i32, i32
  }
  func.func @transform_2(%arg0: i32) -> (i32, i32) {
    %c0_i32 = arith.constant 0 : i32
    %c0_i32_0 = arith.constant 0 : i32
    %c0_i32_1 = arith.constant 0 : i32
    return %c0_i32, %c0_i32_0 : i32, i32
  }
  func.func @transform_3(%arg0: i32) -> (i32, i32) {
    %c0_i32 = arith.constant 0 : i32
    %c0_i32_0 = arith.constant 0 : i32
    %c0_i32_1 = arith.constant 0 : i32
    return %c0_i32, %c0_i32_0 : i32, i32
  }
  func.func @transform_4(%arg0: i32) -> (i32, i32) {
    %c0_i32 = arith.constant 0 : i32
    %c0_i32_0 = arith.constant 0 : i32
    %c0_i32_1 = arith.constant 0 : i32
    return %c0_i32, %c0_i32_0 : i32, i32
  }
  func.func @transform_5(%arg0: i32) -> (i32, i32) {
    %c0_i32 = arith.constant 0 : i32
    %c0_i32_0 = arith.constant 0 : i32
    return %arg0, %c0_i32 : i32, i32
  }
}

</mosaic_0001>

<bundles_post_ra>
// kernel: _lambda_.1
= control target key start
LH: loop header
LB: loop body
LE: loop exit
PB: predicated region body
PF: predicated region fallthrough
CT: control target
= control target key end

     0   :  { %10 = vsyncpa [#allocation3], 0  ;;  %s861_s0 = inlined_call_operand.vmem [shape: f32[16,32], index: 0, kind: input, shape index: {}]   ;;  %s862_s1 = inlined_call_operand.hbm [shape: bf16[32,128], index: 1, kind: input, shape index: {}]   ;;  %s863_s2 = inlined_call_operand.vmem [shape: f32[1,128], index: 2, kind: input, shape index: {}]   ;;  %s864_s3 = inlined_call_operand.hbm [shape: bf16[128,128], index: 3, kind: input, shape index: {}]   ;;  %s865_s4 = inlined_call_operand.vmem [shape: f32[1,128], index: 4, kind: input, shape index: {}]   ;;  %s866_s5 = inlined_call_operand.vmem [shape: f32[16,128], index: 5, kind: output, shape index: {}]  }
   0x1   :  { %11 = vsyncpa [#allocation5], 0  ;;  %s755_s18 = smov 0  }
   0x2 LB: > { %s761_s19 = sadd.s32 4294967295, %s717_s18   ;;  %p536_p0 = scmp.ge.s32.totalorder %s717_s18, 1  ;;  %s717_s18 = sphi %s755_s18, %s17_s18  }
   0x3   : > { %p158_p1 = scmp.lt.s32.totalorder %s717_s18, 3  ;;  %s719_s20 = smov [#allocation2]  }
   0x4   : > { %s170_s21 = sshll.u32 %s719_s20, 4  ;;  %p867_p3 = scmp.eq.s32.totalorder %s761_s19, 0  ;;  %s171_s21 = int_to_ptr.vmem [resolvable:$true] %s170_s21 }
   0x5   : > { %p765_p2 = pnand %p536_p0, %p158_p1  ;;  %s720_s23 = smov [#allocation4]  }
   0x6   : > { %s186_s24 = sshll.u32 %s720_s23, 4  ;;  %s647_s28 = scalar_lea.hbm %s862_s1, 256  ;;  %s778_s24 = int_to_ptr.vmem [resolvable:$true] %s186_s24 }
   0x7   : > { %s869_s22 = scalar_select %p765_p2, 1, 0 }
   0x8   : > { %p608_p4 = pneg %p765_p2  ;;  %p648_p6 = scmp.ne.s32.totalorder %s862_s1, %s647_s28 }
   0x9   : > { %p654_p10 = scmp.lt.u32.totalorder %s647_s28, %s862_s1 }
   0xa   : > { %p774_p5 = pnand %p867_p3, %p608_p4 }
   0xc   : > { %p649_p7 = pneg %p774_p5 }
   0xe   : > { %p650_p8 = pnand %p649_p7, %p648_p6 }
  0x10   : > { %p651_p9 = pneg %p650_p8 }
  0x12   : > { %p656_p11 = pnand %p654_p10, %p651_p9 }
  0x14   : > { %659 = shalt.err (!%p656_p11)
}
  0x15   : > { %s660_s8 = scalar_lea.vmem %s171_s21, 256  ;;  %p668_p1 = scmp.lt.s32.totalorder %s171_s21, %s171_s21 }
  0x16   : > { %p661_p12 = scmp.ne.s32.totalorder %s171_s21, %s660_s8  ;;  %p669_p4 = scmp.lt.s32.totalorder %s660_s8, %s660_s8 }
  0x18   : > { %p663_p13 = pnand %p661_p12, %p649_p7  ;;  %p670_p3 = por %p669_p4, %p668_p1 }
  0x1a   : > { %p664_p0 = pneg %p663_p13 }
  0x1c   : > { %p671_p2 = pnand %p670_p3, %p664_p0 }
  0x1e   : > { %674 = shalt.err (!%p671_p2)
}
  0x1f   : > { %s721_s9 = smov 64   ;;  %s722_s10 = smov 4  }
  0x20   : > { %611 = dma.hbm_to_vmem [thread:$0]  (!%p774_p5), %s862_s1, 256, %s171_s21, [#allocation3], %s721_s9, %s721_s9, %s722_s10  }
  0x21   : > { %s675_s15 = scalar_lea.hbm %s864_s3, 1024 }
  0x22   : > { %p676_p6 = scmp.ne.s32.totalorder %s864_s3, %s675_s15  ;;  %p682_p8 = scmp.lt.u32.totalorder %s675_s15, %s864_s3 }
  0x24   : > { %p678_p2 = pnand %p676_p6, %p649_p7 }
  0x26   : > { %p679_p3 = pneg %p678_p2 }
  0x28   : > { %p684_p9 = pnand %p682_p8, %p679_p3 }
  0x2a   : > { %687 = shalt.err (!%p684_p9)
}
  0x2b   : > { %s688_s21 = scalar_lea.vmem %s778_s24, 1024  ;;  %p696_p13 = scmp.lt.s32.totalorder %s778_s24, %s778_s24 }
  0x2c   : > { %p689_p10 = scmp.ne.s32.totalorder %s778_s24, %s688_s21  ;;  %p697_p0 = scmp.lt.s32.totalorder %s688_s21, %s688_s21 }
  0x2e   : > { %p691_p11 = pnand %p689_p10, %p649_p7  ;;  %p698_p1 = por %p697_p0, %p696_p13 }
  0x30   : > { %p692_p12 = pneg %p691_p11 }
  0x32   : > { %p699_p4 = pnand %p698_p1, %p692_p12 }
  0x34   : > { %702 = shalt.err (!%p699_p4)
}
  0x35   : > { %614 = dma.hbm_to_vmem [thread:$0]  (!%p774_p5), %s864_s3, 1024, %s778_s24, [#allocation5], %s721_s9, %s721_s9, %s722_s10  }
  0x36   : > { %p871_p6 = scmp.ne.s32.totalorder %s869_s22, 0 }
  0x37   : > { %p872_p2 = scmp.eq.s32.totalorder (!%p871_p6), %s761_s19, 0 }
  0x38   : > { %212 = sbr.rel (%p871_p6) target bundleno = 556 (0x22c), region = 40 }
  0x3f   : > { %708 = dma.done.wait (%p872_p2), [#allocation3], 256   ;;  %p873_p7 = pmov %p872_p2 }
  0x40   : > { %p874_p3 = pmov %p872_p2 }
  0x41   : > { %710 = vsyncadd (%p873_p7), [#allocation3], 4294967040 }
  0x42   : > { %712 = dma.done.wait (%p874_p3), [#allocation5], 1024   ;;  %p875_p8 = pmov %p872_p2 }
  0x43   : > { %p242_p9 = scmp.lt.s32.totalorder %s761_s19, 1  ;;  %v723_v0 = vmov 0.0   ;;  %vm724_vm0 = vmmov 0   ;;  %v633_v1 = vld [vmem:[#allocation2] sm:$0xff]   ;;  %v634_v2 = vld [vmem:[#allocation2 + $0x8] sm:$0xff]   ;;  %vm276_vm1 = vcmask 261120  }
  0x44   : > { %714 = vsyncadd (%p875_p8), [#allocation5], 4294966272  ;;  %572 = vmatprep.subr.bf16.mxu0 %v723_v0  ;;  %576 = vmatprep.mubr.msk.bf16.mxu0 %vm724_vm0, %v723_v0  ;;  %v635_v5 = vld [vmem:[#allocation4] sm:$0xff]   ;;  %v636_v6 = vld [vmem:[#allocation4 + $0x8] sm:$0xff]  }
  0x45   : > { %s877_s19 = smov (!%p242_p9, %s761_s19), 1  ;;  %580 = vmatprep.subr.bf16.mxu1 %v723_v0  ;;  %596 = vmatprep.mubr.msk.bf16.mxu1 %vm724_vm0, %v723_v0  ;;  %v637_v7 = vld [vmem:[#allocation4 + $0x10] sm:$0xff]   ;;  %v638_v8 = vld [vmem:[#allocation4 + $0x18] sm:$0xff]   ;;  %v639_v9 = vld [vmem:[#allocation4 + $0x20] sm:$0xff]  }
  0x46   : > { %s543_s22 = sshll.u32 %s877_s19, 3  ;;  %573 = vmatpush3.bf16.msra.mxu0 %v633_v1  ;;  %581 = vmatpush3.bf16.msra.mxu1 %v635_v5  ;;  %v640_v10 = vld [vmem:[#allocation4 + $0x28] sm:$0xff]   ;;  %v641_v11 = vld [vmem:[#allocation4 + $0x30] sm:$0xff]   ;;  %v642_v12 = vld [vmem:[#allocation4 + $0x38] sm:$0xff]  }
  0x47   : > { %s245_s28 = scalar_lea.vmem %s861_s0, %s543_s22  ;;  %574 = vmatprep.subr.bf16.mxu0 %v723_v0  ;;  %582 = vmatprep.subr.bf16.mxu1 %v723_v0  ;;  %v545_v13 = vld [vmem:[%s863_s2] ss:$0 sm:$0xff]  ;;  %s249_s10 = scalar_lea.vmem %s866_s5, %s543_s22 }
  0x48   : > { %v251_v3 = vld [vmem:[%s245_s28] sm:$0xff] }
  0x49   : > { %v252_v4 = vpack.c.bf16 %v251_v3, %v251_v3  ;;  %v549_v45 = vld [vmem:[%s865_s4] ss:$0 sm:$0xff] }
  0x4a   : > { %575 = vmatpush3.bf16.msra.mxu0 %v634_v2  ;;  %583 = vmatpush3.bf16.msra.mxu1 %v636_v6 }
  0x4b   : > { %584 = vmatprep.subr.bf16.mxu1 %v723_v0 }
  0x4d   : > { %577 = vmatmul.mubr.msk.bf16.vlgmr.msra.gmra.mrb[0].mxu0 %vm276_vm1, %v252_v4 }
  0x4e   : > { %585 = vmatpush3.bf16.msra.mxu1 %v637_v7 }
  0x4f   : > { %586 = vmatprep.subr.bf16.mxu1 %v723_v0 }
  0x52   : > { %587 = vmatpush3.bf16.msra.mxu1 %v638_v8 }
  0x53   : > { %588 = vmatprep.subr.bf16.mxu1 %v723_v0 }
  0x56   : > { %589 = vmatpush3.bf16.msra.mxu1 %v639_v9 }
  0x57   : > { %590 = vmatprep.subr.bf16.mxu1 %v723_v0 }
  0x5a   : > { %591 = vmatpush3.bf16.msra.mxu1 %v640_v10 }
  0x5b   : > { %592 = vmatprep.subr.bf16.mxu1 %v723_v0 }
  0x5e   : > { %593 = vmatpush3.bf16.msra.mxu1 %v641_v11 }
  0x5f   : > { %594 = vmatprep.subr.bf16.mxu1 %v723_v0 }
  0x62   : > { %595 = vmatpush3.bf16.msra.mxu1 %v642_v12 }
 0x120   : > { %v314_v14 = vpop.f32.mrb[0].mxu0 }
 0x121   : > { %v315_v15 = vadd.f32 %v545_v13, %v314_v14  ;;  %v578_v16 = vpop.f32.mrb[1].mxu0 }
 0x122   : > { %v317_v17 = vpop.f32.mrb[2].mxu0 }
 0x123   : > { %v321_v18 = vmul.f32 0.70710677, %v315_v15  ;;  %v579_v19 = vpop.f32.mrb[3].mxu0  ;;  %v320_v41 = vmul.f32 0.5, %v315_v15 }
 0x125   : > { %v322_v20 = vand.u32 2147483647, %v321_v18  ;;  %vm341_vm2 = vcmp.ge.f32.partialorder %v321_v18, 0.0 }
 0x127   : > { %v323_v21 = vmul.f32 0.3275911, %v322_v20  ;;  %v335_v23 = vsub.f32 0.0, %v322_v20 }
 0x129   : > { %v324_v22 = vadd.f32 1.0, %v323_v21  ;;  %v336_v25 = vmul.f32 %v335_v23, %v322_v20 }
 0x12b   : > { %643 = vrcp.f32 %v324_v22  ;;  %v337_v28 = vmul.f32 1.442695, %v336_v25 }
 0x12d   : > { %645 = vpow2.f32 %v337_v28 }
 0x135   : > { %v644_v24 = vpop.eup %643 }
 0x136   : > { %v326_v26 = vmul.f32 1.0614054, %v644_v24 }
 0x137   : > { %v646_v36 = vpop.eup %645 }
 0x138   : > { %v327_v27 = vadd.f32 -1.4531521, %v326_v26 }
 0x13a   : > { %v328_v29 = vmul.f32 %v644_v24, %v327_v27 }
 0x13c   : > { %v329_v30 = vadd.f32 1.4214138, %v328_v29 }
 0x13e   : > { %v330_v31 = vmul.f32 %v644_v24, %v329_v30 }
 0x140   : > { %v331_v32 = vadd.f32 -0.28449672, %v330_v31 }
 0x142   : > { %v332_v33 = vmul.f32 %v644_v24, %v331_v32 }
 0x144   : > { %v333_v34 = vadd.f32 0.2548296, %v332_v33 }
 0x146   : > { %v334_v35 = vmul.f32 %v644_v24, %v333_v34 }
 0x148   : > { %v339_v37 = vmul.f32 %v646_v36, %v334_v35 }
 0x14a   : > { %v340_v38 = vsub.f32 1.0, %v339_v37 }
 0x14c   : > { %v342_v39 = vsub.f32 0.0, %v340_v38 }
 0x14e   : > { %v343_v40 = vsel %vm341_vm2, %v340_v38, %v342_v39 }
 0x14f   : > { %v344_v42 = vadd.f32 1.0, %v343_v40 }
 0x151   : > { %v345_v43 = vmul.f32 %v344_v42, %v320_v41 }
 0x153   : > { %v346_v44 = vpack.c.bf16 %v345_v43, %v345_v43 }
 0x155   : > { %597 = vmatmul.mubr.bf16.vlgmr.msra.gmra.mrb[0].mxu1 %v346_v44 }
 0x228   : > { %v452_v46 = vpop.f32.mrb[0].mxu1 }
 0x229   : > { %v453_v47 = vadd.f32 %v549_v45, %v452_v46  ;;  %v598_v48 = vpop.f32.mrb[1].mxu1 }
 0x22a   : > { %v455_v49 = vpop.f32.mrb[2].mxu1 }
 0x22b   : > { %458 = vst [vmem:[%s249_s10] sm:$0xff] %v453_v47  ;;  %v599_v50 = vpop.f32.mrb[3].mxu1 }
 0x22c PF: > { %s17_s18 = sadd.s32 1, %s717_s18  }
 0x22d   : > { %p14_p5 = scmp.ge.s32.totalorder %s17_s18, 4  }
 0x22f   :  { %16 = sbr.rel (!%p14_p5) target bundleno = 2 (0x2), region = 79 }
 0x236   :  { %478 = vsyncpa [#allocation3], 1 }
 0x237   :  { %480 = vsyncpa [#allocation3 + $0x1], 1 }
 0x238   :  { %481 = vsyncpa [#allocation5], 1 }

</bundles_post_ra>
